<compile_context>
chip_gen: v7x
topology: tpu7x:2x2x1
jax: 0.10.0
libtpu: 0.0.40
codegen_flags: <defaults>
</compile_context>

<pallas_src>
import jax
import jax.numpy as jnp
from jax.experimental import pallas as pl
from jax.experimental.pallas import tpu as pltpu


def mlp_kernel(x_ref, w1_ref, b1_ref, w2_ref, b2_ref, w3_ref, b3_ref, o_ref):
    # x_ref : (TB, D_in) f32  -- batch tile streamed per grid step (double-buffered)
    # w1    : (D_in, 64), w2: (64, 32), w3: (32, 1)  -- VMEM resident (constant index_map)
    # b1/b2/b3 : (1, 64)/(1, 32)/(1, 1)
    # o_ref : (TB, 1) f32     -- exact model output column, no lane padding
    x = x_ref[...]
    h1 = jnp.maximum(
        jnp.dot(x, w1_ref[...], preferred_element_type=jnp.float32) + b1_ref[...], 0.0)
    h2 = jnp.maximum(
        jnp.dot(h1, w2_ref[...], preferred_element_type=jnp.float32) + b2_ref[...], 0.0)
    out = jnp.dot(h2, w3_ref[...], preferred_element_type=jnp.float32) + b3_ref[...]
    o_ref[...] = out.astype(o_ref.dtype)


def _round_up(n, m):
    return ((n + m - 1) // m) * m


def _pick_tile(B, max_tile):
    """Batch tile: multiple of 8, <= max_tile, and (for batches big enough) small
    enough that the grid has >= 4 steps so v7x's two TensorCores both get work."""
    B8 = _round_up(max(B, 1), 8)
    TB = min(max_tile, B8)
    if B8 >= 32:
        TB = min(TB, _round_up(-(-B8 // 4), 8))
    return max(TB, 8)


def regression_model_forward(x, params, *, max_tile=2048):
    """x: (B, D_in) f32. params: (w1,b1,w2,b2,w3,b3); wK stored as (in,out), bK as (1,out)."""
    w1, b1, w2, b2, w3, b3 = params
    B, d_in = x.shape

    TB = _pick_tile(B, max_tile)
    B_pad = _round_up(B, TB)
    grid = (B_pad // TB,)

    # Pad batch so there is no partial last tile / masking.
    if B_pad != B:
        x = jnp.pad(x, ((0, B_pad - B), (0, 0)))

    const2 = lambda i: (0, 0)  # weights/biases: same block every step -> DMAed once

    param_bytes = sum(int(a.size) * 4 for a in (w1, b1, w2, b2, w3, b3))
    cost = pl.CostEstimate(
        flops=2 * B_pad * (d_in * 64 + 64 * 32 + 32 * 1),
        transcendentals=0,
        bytes_accessed=B_pad * d_in * 4 + B_pad * 4 + param_bytes,
    )

    out = pl.pallas_call(
        mlp_kernel,
        out_shape=jax.ShapeDtypeStruct((B_pad, 1), jnp.float32),
        grid=grid,
        in_specs=[
            pl.BlockSpec((TB, d_in), lambda i: (i, 0)),   # x: batch-tiled, pipelined
            pl.BlockSpec(w1.shape, const2),
            pl.BlockSpec(b1.shape, const2),
            pl.BlockSpec(w2.shape, const2),
            pl.BlockSpec(b2.shape, const2),
            pl.BlockSpec(w3.shape, const2),
            pl.BlockSpec(b3.shape, const2),
        ],
        out_specs=pl.BlockSpec((TB, 1), lambda i: (i, 0)),
        compiler_params=pltpu.CompilerParams(
            dimension_semantics=("parallel",),      # shard batch tiles across TCs (v7x)
            vmem_limit_bytes=32 * 1024 * 1024,      # fits v5e/v6e/v7x scoped budgets
        ),
        cost_estimate=cost,
    )(x, w1, b1, w2, b2, w3, b3)

    return out[:B]


def init_params(key, input_size):
    """Deterministic init mimicking nn.Linear default (uniform in +-1/sqrt(fan_in))."""
    dims = [(input_size, 64), (64, 32), (32, 1)]
    params = []
    for fan_in, fan_out in dims:
        key, kw, kb = jax.random.split(key, 3)
        bound = 1.0 / jnp.sqrt(jnp.float32(fan_in))
        w = jax.random.uniform(kw, (fan_in, fan_out), jnp.float32, -bound, bound)
        b = jax.random.uniform(kb, (1, fan_out), jnp.float32, -bound, bound)
        params.extend([w, b])
    return tuple(params)


def reference_forward(x, params):
    """Pure-JAX f32 reference matching the PyTorch module exactly."""
    w1, b1, w2, b2, w3, b3 = params
    h1 = jnp.maximum(x @ w1 + b1, 0.0)
    h2 = jnp.maximum(h1 @ w2 + b2, 0.0)
    return h2 @ w3 + b3


if __name__ == "__main__":
    key = jax.random.PRNGKey(0)
    batch, input_size = 8, 16
    kx, kp, kx2 = jax.random.split(key, 3)
    params = init_params(kp, input_size)

    # Small shape consistent with the module.
    x = jax.random.normal(kx, (batch, input_size), jnp.float32)
    out = jax.block_until_ready(regression_model_forward(x, params))
    ref = reference_forward(x, params)
    assert out.shape == (batch, 1)
    assert jnp.allclose(out, ref, atol=1e-4, rtol=1e-4)

    # Larger batch exercises the batch grid, padding and the parallel axis (>=4 steps).
    x_big = jax.random.normal(kx2, (1000, input_size), jnp.float32)
    out_big = jax.block_until_ready(regression_model_forward(x_big, params))
    ref_big = reference_forward(x_big, params)
    assert out_big.shape == (1000, 1)
    assert jnp.allclose(out_big, ref_big, atol=1e-4, rtol=1e-4)

    print("KERNEL_OK")
</pallas_src>

<mosaic_0001>
module attributes {stable_mosaic.version = 11 : i64} {
  func.func @mlp_kernel(%arg0: i32, %arg1: memref<8x16xf32, #tpu.memory_space<vmem>>, %arg2: memref<16x64xf32, #tpu.memory_space<vmem>>, %arg3: memref<1x64xf32, #tpu.memory_space<vmem>>, %arg4: memref<64x32xf32, #tpu.memory_space<vmem>>, %arg5: memref<1x32xf32, #tpu.memory_space<vmem>>, %arg6: memref<32x1xf32, #tpu.memory_space<vmem>>, %arg7: memref<1x1xf32, #tpu.memory_space<vmem>>, %arg8: memref<8x1xf32, #tpu.memory_space<vmem>>) attributes {dimension_semantics = [#tpu.dimension_semantics<parallel>], iteration_bounds = array<i64: 1>, scalar_prefetch = 0 : i64, scratch_operands = 0 : i64, tpu.core_type = #tpu.core_type<tc>, window_params = [{transform_indices = @transform_0, window_bounds = array<i64: 8, 16>}, {pipeline_mode = #tpu.pipeline_mode<synchronous>, transform_indices = @transform_1, window_bounds = array<i64: 16, 64>}, {pipeline_mode = #tpu.pipeline_mode<synchronous>, transform_indices = @transform_2, window_bounds = array<i64: 1, 64>}, {pipeline_mode = #tpu.pipeline_mode<synchronous>, transform_indices = @transform_3, window_bounds = array<i64: 64, 32>}, {pipeline_mode = #tpu.pipeline_mode<synchronous>, transform_indices = @transform_4, window_bounds = array<i64: 1, 32>}, {pipeline_mode = #tpu.pipeline_mode<synchronous>, transform_indices = @transform_5, window_bounds = array<i64: 32, 1>}, {pipeline_mode = #tpu.pipeline_mode<synchronous>, transform_indices = @transform_6, window_bounds = array<i64: 1, 1>}, {transform_indices = @transform_7, window_bounds = array<i64: 8, 1>}]} {
    %c0 = arith.constant 0 : index
    %c0_0 = arith.constant 0 : index
    %0 = vector.load %arg1[%c0, %c0_0] : memref<8x16xf32, #tpu.memory_space<vmem>>, vector<8x16xf32>
    %c0_1 = arith.constant 0 : index
    %c0_2 = arith.constant 0 : index
    %1 = vector.load %arg2[%c0_1, %c0_2] : memref<16x64xf32, #tpu.memory_space<vmem>>, vector<16x64xf32>
    %cst = arith.constant dense<0.000000e+00> : vector<8x64xf32>
    %2 = tpu.matmul %0, %1, %cst {dimension_numbers = #tpu.dot_dimension_numbers<[1], [0], [0], [1], [0, 0, 1, 1], [], []>} : vector<8x16xf32>, vector<16x64xf32>, vector<8x64xf32> -> vector<8x64xf32>
    %c0_3 = arith.constant 0 : index
    %c0_4 = arith.constant 0 : index
    %3 = vector.load %arg3[%c0_3, %c0_4] : memref<1x64xf32, #tpu.memory_space<vmem>>, vector<1x64xf32>
    %4 = vector.broadcast %3 : vector<1x64xf32> to vector<8x64xf32>
    %5 = arith.addf %2, %4 : vector<8x64xf32>
    %cst_5 = arith.constant 0.000000e+00 : f32
    %6 = vector.broadcast %cst_5 : f32 to vector<8x64xf32>
    %7 = arith.maximumf %5, %6 : vector<8x64xf32>
    %c0_6 = arith.constant 0 : index
    %c0_7 = arith.constant 0 : index
    %8 = vector.load %arg4[%c0_6, %c0_7] : memref<64x32xf32, #tpu.memory_space<vmem>>, vector<64x32xf32>
    %cst_8 = arith.constant dense<0.000000e+00> : vector<8x32xf32>
    %9 = tpu.matmul %7, %8, %cst_8 {dimension_numbers = #tpu.dot_dimension_numbers<[1], [0], [0], [1], [0, 0, 1, 1], [], []>} : vector<8x64xf32>, vector<64x32xf32>, vector<8x32xf32> -> vector<8x32xf32>
    %c0_9 = arith.constant 0 : index
    %c0_10 = arith.constant 0 : index
    %10 = vector.load %arg5[%c0_9, %c0_10] : memref<1x32xf32, #tpu.memory_space<vmem>>, vector<1x32xf32>
    %11 = vector.broadcast %10 : vector<1x32xf32> to vector<8x32xf32>
    %12 = arith.addf %9, %11 : vector<8x32xf32>
    %cst_11 = arith.constant 0.000000e+00 : f32
    %13 = vector.broadcast %cst_11 : f32 to vector<8x32xf32>
    %14 = arith.maximumf %12, %13 : vector<8x32xf32>
    %c0_12 = arith.constant 0 : index
    %c0_13 = arith.constant 0 : index
    %15 = vector.load %arg6[%c0_12, %c0_13] : memref<32x1xf32, #tpu.memory_space<vmem>>, vector<32x1xf32>
    %cst_14 = arith.constant dense<0.000000e+00> : vector<8x1xf32>
    %16 = tpu.matmul %14, %15, %cst_14 {dimension_numbers = #tpu.dot_dimension_numbers<[1], [0], [0], [1], [0, 0, 1, 1], [], []>} : vector<8x32xf32>, vector<32x1xf32>, vector<8x1xf32> -> vector<8x1xf32>
    %c0_15 = arith.constant 0 : index
    %c0_16 = arith.constant 0 : index
    %17 = vector.load %arg7[%c0_15, %c0_16] : memref<1x1xf32, #tpu.memory_space<vmem>>, vector<1x1xf32>
    %18 = vector.broadcast %17 : vector<1x1xf32> to vector<8x1xf32>
    %19 = arith.addf %16, %18 : vector<8x1xf32>
    %c0_17 = arith.constant 0 : index
    %c0_18 = arith.constant 0 : index
    %20 = vector.load %arg8[%c0_17, %c0_18] : memref<8x1xf32, #tpu.memory_space<vmem>>, vector<8x1xf32>
    tpu.vector_store %arg8[%c0_17, %c0_18], %19 {strides = array<i32>} : memref<8x1xf32, #tpu.memory_space<vmem>>, vector<8x1xf32>,
    return
  }
  func.func @transform_0(%arg0: i32) -> (i32, i32) {
    %c0_i32 = arith.constant 0 : i32
    %c0_i32_0 = arith.constant 0 : i32
    return %arg0, %c0_i32 : i32, i32
  }
  func.func @transform_1(%arg0: i32) -> (i32, i32) {
    %c0_i32 = arith.constant 0 : i32
    %c0_i32_0 = arith.constant 0 : i32
    %c0_i32_1 = arith.constant 0 : i32
    return %c0_i32, %c0_i32_0 : i32, i32
  }
  func.func @transform_2(%arg0: i32) -> (i32, i32) {
    %c0_i32 = arith.constant 0 : i32
    %c0_i32_0 = arith.constant 0 : i32
    %c0_i32_1 = arith.constant 0 : i32
    return %c0_i32, %c0_i32_0 : i32, i32
  }
  func.func @transform_3(%arg0: i32) -> (i32, i32) {
    %c0_i32 = arith.constant 0 : i32
    %c0_i32_0 = arith.constant 0 : i32
    %c0_i32_1 = arith.constant 0 : i32
    return %c0_i32, %c0_i32_0 : i32, i32
  }
  func.func @transform_4(%arg0: i32) -> (i32, i32) {
    %c0_i32 = arith.constant 0 : i32
    %c0_i32_0 = arith.constant 0 : i32
    %c0_i32_1 = arith.constant 0 : i32
    return %c0_i32, %c0_i32_0 : i32, i32
  }
  func.func @transform_5(%arg0: i32) -> (i32, i32) {
    %c0_i32 = arith.constant 0 : i32
    %c0_i32_0 = arith.constant 0 : i32
    %c0_i32_1 = arith.constant 0 : i32
    return %c0_i32, %c0_i32_0 : i32, i32
  }
  func.func @transform_6(%arg0: i32) -> (i32, i32) {
    %c0_i32 = arith.constant 0 : i32
    %c0_i32_0 = arith.constant 0 : i32
    %c0_i32_1 = arith.constant 0 : i32
    return %c0_i32, %c0_i32_0 : i32, i32
  }
  func.func @transform_7(%arg0: i32) -> (i32, i32) {
    %c0_i32 = arith.constant 0 : i32
    %c0_i32_0 = arith.constant 0 : i32
    return %arg0, %c0_i32 : i32, i32
  }
}

</mosaic_0001>

<bundles_post_ra>
// kernel: tpu_custom_call.1
= control target key start
LH: loop header
LB: loop body
LE: loop exit
PB: predicated region body
PF: predicated region fallthrough
CT: control target
= control target key end

     0   :  { %v378_v0 = vmov 0.0|0.0   ;;  %vm379_vm0 = vmmov 0   ;;  %v380_v3 = vmov 0.0   ;;  %vm38_vm1 = vcmask 130048   ;;  %s481_s1 = inlined_call_operand.vmem [shape: f32[16,64], index: 1, kind: input, shape index: {}]   ;;  %s482_s3 = inlined_call_operand.vmem [shape: f32[64,32], index: 3, kind: input, shape index: {}]   ;;  %s483_s0 = inlined_call_operand.vmem [shape: f32[8,16], index: 0, kind: input, shape index: {}]   ;;  %s484_s5 = inlined_call_operand.vmem [shape: f32[32,1], index: 5, kind: input, shape index: {}]   ;;  %s485_s2 = inlined_call_operand.vmem [shape: f32[1,64], index: 2, kind: input, shape index: {}]   ;;  %s486_s6 = inlined_call_operand.<no memory space> [shape: f32[1,1], index: 6, kind: input, shape index: {}]   ;;  %s487_s4 = inlined_call_operand.vmem [shape: f32[1,32], index: 4, kind: input, shape index: {}]   ;;  %s488_s7 = inlined_call_operand.vmem [shape: f32[8,1], index: 7, kind: output, shape index: {}]  }
   0x1   :  { %354 = vmatprep.subr.bf16.mxu0 %v378_v0  ;;  %v29_v1 = vld [vmem:[%s481_s1] sm:$0xff]  ;;  %v30_v2 = vld [vmem:[%s481_s1 + $0x8] sm:$0xff]  ;;  %321 = vmatprep.mubr.msk.f32.mxu0 %vm379_vm0, %v380_v3  ;;  %v115_v7 = vld [vmem:[%s482_s3 + $0x10] sm:$0xff]  ;;  %vm128_vm2 = vcmask 523264   ;;  %v12_v29 = vstv %s486_s6  ;;  %vm214_vm3 = vcmask 261120   ;;  %vm288_vm4 = vcmask 7168  }
   0x2   :  { %v355_v4 = vpack.c.bf16 %v30_v2, %v29_v1  ;;  %357 = vmatprep.subr.bf16.mxu1 %v378_v0  ;;  %v113_v5 = vld [vmem:[%s482_s3] sm:$0xff]  ;;  %v114_v6 = vld [vmem:[%s482_s3 + $0x8] sm:$0xff]  ;;  %340 = vmatprep.mubr.msk.f32.mxu1 %vm379_vm0, %v380_v3  ;;  %v116_v9 = vld [vmem:[%s482_s3 + $0x18] sm:$0xff]  ;;  %13 = vst [vmem:[#allocation2] sm:$0x1] %v12_v29 }
   0x3   :  { %v358_v8 = vpack.c.bf16 %v114_v6, %v113_v5  ;;  %v28_v10 = vld [vmem:[%s483_s0] sm:$0xff]  ;;  %v361_v11 = vpack.c.bf16 %v116_v9, %v115_v7  ;;  %v118_v13 = vld [vmem:[%s482_s3 + $0x28] sm:$0xff]  ;;  %v119_v15 = vld [vmem:[%s482_s3 + $0x30] sm:$0xff] }
   0x4   :  { %356 = vmatpush3.bf16.msra.mxu0 %v355_v4  ;;  %v117_v12 = vld [vmem:[%s482_s3 + $0x20] sm:$0xff]  ;;  %v120_v16 = vld [vmem:[%s482_s3 + $0x38] sm:$0xff]  ;;  %v204_v19 = vld [vmem:[%s484_s5 + $0x8] sm:$0xff] }
   0x5   :  { %359 = vmatpush3.bf16.msra.mxu1 %v358_v8  ;;  %369 = vmatprep.subr.bf16.mxu0 %v378_v0  ;;  %v364_v14 = vpack.c.bf16 %v118_v13, %v117_v12  ;;  %v367_v17 = vpack.c.bf16 %v120_v16, %v119_v15  ;;  %v203_v18 = vld [vmem:[%s484_s5] sm:$0xff]  ;;  %v205_v26 = vld [vmem:[%s484_s5 + $0x10] sm:$0xff]  ;;  %v206_v27 = vld [vmem:[%s484_s5 + $0x18] sm:$0xff] }
   0x6   :  { %360 = vmatprep.subr.bf16.mxu1 %v378_v0  ;;  %v370_v20 = vpack.c.bf16 %v204_v19, %v203_v18  ;;  %v294_v21 = vld [vmem:[%s485_s2] ss:$0 sm:$0xff]  ;;  %v373_v28 = vpack.c.bf16 %v206_v27, %v205_v26 }
   0x7   :  { %322 = vmatmul.mubr.msk.f32.vlgmr.msra.gmra.mrb[0].mxu0 %vm38_vm1, %v28_v10  ;;  %v296_v30 = vld [vmem:[%s487_s4] ss:$0 sm:$0xff] }
   0x8   :  { %351 = vmatprep.mubr.msk.f32.mxu0 %vm379_vm0, %v380_v3  ;;  %371 = vmatpush3.bf16.msra.mxu0 %v370_v20 }
   0x9   :  { %362 = vmatpush3.bf16.msra.mxu1 %v361_v11  ;;  %372 = vmatprep.subr.bf16.mxu0 %v378_v0  ;;  %v298_v35 = vld [vmem:[#allocation2] ss:$0 sm:$0xff] }
   0xa   :  { %363 = vmatprep.subr.bf16.mxu1 %v378_v0 }
   0xc   :  { %374 = vmatpush3.bf16.msra.mxu0 %v373_v28 }
   0xd   :  { %365 = vmatpush3.bf16.msra.mxu1 %v364_v14 }
   0xe   :  { %366 = vmatprep.subr.bf16.mxu1 %v378_v0 }
  0x11   :  { %368 = vmatpush3.bf16.msra.mxu1 %v367_v17 }
  0xda   :  { %v108_v22 = vpop.f32.mrb[0].mxu0 }
  0xdb   :  { %v109_v23 = vadd.f32 %v294_v21, %v108_v22  ;;  %v323_v24 = vpop.f32.mrb[1].mxu0 }
  0xdd   :  { %v112_v25 = vmax.f32 %v109_v23, 0.0 }
  0xdf   :  { %341 = vmatmul.mubr.msk.f32.vlgmr.msra.gmra.mrb[0].mxu1 %vm128_vm2, %v112_v25 }
 0x1b2   :  { %v198_v31 = vpop.f32.mrb[0].mxu1 }
 0x1b3   :  { %v199_v32 = vadd.f32 %v296_v30, %v198_v31  ;;  %v342_v33 = vpop.f32.mrb[1].mxu1 }
 0x1b5   :  { %v202_v34 = vmax.f32 %v199_v32, 0.0 }
 0x1b7   :  { %352 = vmatmul.mubr.msk.f32.vlgmr.msra.gmra.mrb[2].mxu0 %vm214_vm3, %v202_v34 }
 0x28a   :  { %v284_v36 = vpop.f32.mrb[2].mxu0 }
 0x28b   :  { %v285_v37 = vadd.f32 %v298_v35, %v284_v36  ;;  %v353_v38 = vpop.f32.mrb[3].mxu0 }
 0x28d   :  { %289 = vst.msk [vmem:[%s488_s7] sm:$0xff] %vm288_vm4, %v285_v37 }

</bundles_post_ra>
